<compile_context>
chip_gen: v7x
topology: tpu7x:2x2x1
jax: 0.10.0
libtpu: 0.0.40
codegen_flags: <defaults>
</compile_context>

<pallas_src>
import functools

import jax
import jax.numpy as jnp
from jax.experimental import pallas as pl
from jax.experimental.pallas import tpu as pltpu


def _directional_loss_kernel(yp_ref, yt_ref, out_ref, acc_sse_ref, acc_mat_ref, *,
                             batch: int, seq: int, tile_rows: int,
                             num_tiles: int, tiles_per_core: int, num_cores: int):
    c = pl.program_id(0)            # "parallel" core-split axis
    j = pl.program_id(1)            # "arbitrary" reduction over this core's batch tiles
    t = c * tiles_per_core + j      # global batch-tile index (>= num_tiles when padded)

    tb, T = tile_rows, seq

    # ---- init per-core running sums on this core's first tile ----
    @pl.when(j == 0)
    def _init():
        acc_sse_ref[...] = jnp.zeros_like(acc_sse_ref)
        acc_mat_ref[...] = jnp.zeros_like(acc_mat_ref)

    def _accumulate(masked: bool):
        yp_n = yp_ref[...]
        yt_n = yt_ref[...]

        # MSE term in f32 (in-kernel upcast keeps HBM traffic at native width).
        ypf = yp_n.astype(jnp.float32)
        ytf = yt_n.astype(jnp.float32)
        d = ypf - ytf
        sq = d * d

        # Directional term: bf16-native on bf16 inputs (bf16 VALU on v6e/v7x), f32
        # otherwise.  The sign of a one-step diff of bf16-representable values is the
        # same in bf16 and f32, so this does not change the result.
        if yp_n.dtype == jnp.bfloat16:
            a, b = yp_n, yt_n
        else:
            a, b = ypf, ytf

        if T > 1:
            if T % 128 == 0:
                # Lane-aligned: shifted copy via XLU roll; wrap column (lane 0) is
                # bogus but is zeroed once at finalize (no per-tile column mask).
                dp = (a - pltpu.roll(a, shift=1, axis=1)) > 0
                dt = (b - pltpu.roll(b, shift=1, axis=1)) > 0
                match_f = (dp == dt).astype(jnp.float32)
            else:
                # Small / unaligned T: plain slices; pad the wrap column with zeros.
                dp = (a[:, 1:] - a[:, :-1]) > 0
                dt = (b[:, 1:] - b[:, :-1]) > 0
                match_f = jnp.pad((dp == dt).astype(jnp.float32), ((0, 0), (1, 0)))
        else:
            match_f = jnp.zeros((tb, T), jnp.float32)

        if masked:
            # Only the ragged last batch tile pays for the row-validity mask.
            valid_rows = batch - (num_tiles - 1) * tile_rows
            rows = jax.lax.broadcasted_iota(jnp.int32, (tb, T), 0)
            valid = rows < valid_rows
            sq = jnp.where(valid, sq, 0.0)
            match_f = jnp.where(valid, match_f, 0.0)

        # Fold (tb, T) -> (8, T) with pure VALU adds; full reduction only at finalize.
        acc_sse_ref[...] += jnp.sum(sq.reshape(tb // 8, 8, T), axis=0)
        acc_mat_ref[...] += jnp.sum(match_f.reshape(tb // 8, 8, T), axis=0)

    ragged = (batch % tile_rows) != 0                         # static
    padded = (num_cores * tiles_per_core) != num_tiles        # static
    last = num_tiles - 1

    if not ragged and not padded:
        _accumulate(masked=False)
    else:
        @pl.when(t < last)
        def _full_tiles():
            _accumulate(masked=False)

        @pl.when(t == last)
        def _last_tile():
            _accumulate(masked=ragged)
        # t > last (only when padded): the clamped duplicate tile is skipped entirely.

    # ---- finalize: one full reduction per core, write a lane-dense partials row ----
    @pl.when(j == tiles_per_core - 1)
    def _finalize():
        col = jax.lax.broadcasted_iota(jnp.int32, (8, T), 1)
        matches = jnp.sum(jnp.where(col >= 1, acc_mat_ref[...], 0.0))
        sse = jnp.sum(acc_sse_ref[...])
        lane = jax.lax.broadcasted_iota(jnp.int32, (1, 128), 1)
        out_ref[...] = (jnp.where(lane == 0, sse, 0.0)
                        + jnp.where(lane == 1, matches, 0.0))


def _round_up(x: int, m: int) -> int:
    return ((x + m - 1) // m) * m


def _sublane_multiple(dtype) -> int:
    itemsize = jnp.dtype(dtype).itemsize
    return {1: 32, 2: 16}.get(itemsize, 8)


def _vmem_capacity_bytes(default: int = 64 * 1024 * 1024) -> int:
    """Physical VMEM per TensorCore (64 MiB on v7x, 128 MiB on v5e/v6e)."""
    try:
        info = pltpu.get_tpu_info()
        for attr in ("vmem_capacity_bytes", "vmem_size_bytes", "vmem_bytes"):
            val = getattr(info, attr, None)
            if val:
                return int(val)
    except Exception:
        pass
    return default


def _pick_tile_rows(batch: int, seq: int, dtype, tile_budget_bytes: int) -> int:
    """Largest batch-row tile whose pipeline buffers + f32 temporaries fit the budget."""
    itemsize = jnp.dtype(dtype).itemsize
    sub = _sublane_multiple(dtype)
    # Per-row VMEM cost: 2 inputs x 2 pipeline buffers at native width + ~6 live
    # (tb, T) f32 temporaries (f32 casts, diff, square, shifted copies, match).
    per_row = seq * (2 * 2 * itemsize + 6 * 4)
    tb = max(sub, tile_budget_bytes // per_row)
    # Past ~8 MiB per input block the fixed ~0.35us per-grid-step overhead is <3%.
    tb = min(tb, max(sub, (8 * 1024 * 1024) // (seq * itemsize)))
    tb = min(tb, _round_up(batch, sub))
    return max(sub, (tb // sub) * sub)


def directional_loss(y_pred: jax.Array, y_true: jax.Array,
                     alpha: float = 0.5, beta: float = 2.0,
                     tile_rows: int | None = None) -> jax.Array:
    """Pallas TPU DirectionalLoss.forward. Returns a float32 scalar.

    NOTE: seq == 1 yields NaN in the directional term (mean over an empty diff),
    matching the PyTorch module.
    """
    assert y_pred.shape == y_true.shape
    assert y_pred.ndim == 2, "expected (batch, seq) inputs"
    assert y_pred.dtype == y_true.dtype
    B, T = y_pred.shape

    vmem_cap = _vmem_capacity_bytes()
    vmem_limit = (vmem_cap * 3) // 4         # ~48 MiB on v7x, ~96 MiB on v5e/v6e
    tile_budget = (vmem_limit * 3) // 4      # headroom for compiler-internal scratch

    sub = _sublane_multiple(y_pred.dtype)
    if tile_rows is None:
        tile_rows = _pick_tile_rows(B, T, y_pred.dtype, tile_budget)
    else:
        tile_rows = max(sub, _round_up(int(tile_rows), sub))

    num_tiles = pl.cdiv(B, tile_rows)
    # Leading "parallel" axis: sharded across the 2 TensorCores on v7x; runs serially
    # (and is harmless) on single-TC v5e/v6e.
    num_cores = 2 if num_tiles >= 2 else 1
    tiles_per_core = pl.cdiv(num_tiles, num_cores)

    kernel = functools.partial(
        _directional_loss_kernel,
        batch=B, seq=T, tile_rows=tile_rows,
        num_tiles=num_tiles, tiles_per_core=tiles_per_core, num_cores=num_cores)

    def in_map(c, j):
        # Clamp the (rare) padded trailing step of the last core onto the final real
        # tile; the kernel skips its accumulation.
        return (jnp.minimum(c * tiles_per_core + j, num_tiles - 1), 0)

    partials = pl.pallas_call(
        kernel,
        out_shape=jax.ShapeDtypeStruct((num_cores, 128), jnp.float32),
        grid_spec=pltpu.PrefetchScalarGridSpec(
            num_scalar_prefetch=0,
            grid=(num_cores, tiles_per_core),
            in_specs=[
                pl.BlockSpec((tile_rows, T), in_map),
                pl.BlockSpec((tile_rows, T), in_map),
            ],
            out_specs=pl.BlockSpec((1, 128), lambda c, j: (c, 0)),
            scratch_shapes=[pltpu.VMEM((8, T), jnp.float32),
                            pltpu.VMEM((8, T), jnp.float32)],
        ),
        compiler_params=pltpu.CompilerParams(
            dimension_semantics=("parallel", "arbitrary"),
            vmem_limit_bytes=int(vmem_limit),
        ),
    )(y_pred, y_true)

    # Tiny final combine (a handful of scalar XLA ops).
    sse = jnp.sum(partials[:, 0])
    matches = jnp.sum(partials[:, 1])
    mse_loss = sse / jnp.float32(B * T)
    direction_loss = 1.0 - matches / jnp.float32(B * (T - 1))
    combined = alpha * mse_loss + (1.0 - alpha) * beta * direction_loss
    return combined.astype(jnp.float32)


def _reference_loss(y_pred, y_true, alpha=0.5, beta=2.0):
    yp = y_pred.astype(jnp.float32)
    yt = y_true.astype(jnp.float32)
    mse_loss = jnp.mean((yp - yt) ** 2)
    dp = (yp[:, 1:] - yp[:, :-1]) > 0
    dt = (yt[:, 1:] - yt[:, :-1]) > 0
    direction_loss = 1.0 - jnp.mean((dp == dt).astype(jnp.float32))
    return alpha * mse_loss + (1.0 - alpha) * beta * direction_loss


if __name__ == "__main__":
    keys = jax.random.split(jax.random.PRNGKey(0), 6)

    # 1) Small shape consistent with the module: (batch=2, seq=8), f32.
    #    Single (ragged) tile, unaligned-T fallback path.
    B, T = 2, 8
    yp = jax.random.normal(keys[0], (B, T), dtype=jnp.float32)
    yt = jax.random.normal(keys[1], (B, T), dtype=jnp.float32)
    out = jax.block_until_ready(directional_loss(yp, yt, 0.5, 2.0))
    ref = jax.block_until_ready(_reference_loss(yp, yt, 0.5, 2.0))
    assert jnp.allclose(out, ref, atol=1e-5, rtol=1e-5), (out, ref)

    # 2) bf16, lane-aligned T: multiple tiles + ragged last tile + 2-way core split
    #    (small forced tile_rows so the multi-tile paths are exercised at small size).
    B2, T2 = 50, 256
    yp2 = jax.random.normal(keys[2], (B2, T2), dtype=jnp.float32).astype(jnp.bfloat16)
    yt2 = jax.random.normal(keys[3], (B2, T2), dtype=jnp.float32).astype(jnp.bfloat16)
    out2 = jax.block_until_ready(directional_loss(yp2, yt2, 0.3, 1.5, tile_rows=16))
    ref2 = jax.block_until_ready(_reference_loss(yp2, yt2, 0.3, 1.5))
    assert jnp.allclose(out2, ref2, atol=1e-4, rtol=1e-4), (out2, ref2)

    # 3) f32, odd tile count: exercises the padded/clamped trailing grid step.
    B3, T3 = 40, 128
    yp3 = jax.random.normal(keys[4], (B3, T3), dtype=jnp.float32)
    yt3 = jax.random.normal(keys[5], (B3, T3), dtype=jnp.float32)
    out3 = jax.block_until_ready(directional_loss(yp3, yt3, 0.5, 2.0, tile_rows=16))
    ref3 = jax.block_until_ready(_reference_loss(yp3, yt3, 0.5, 2.0))
    assert jnp.allclose(out3, ref3, atol=1e-5, rtol=1e-5), (out3, ref3)

    print("KERNEL_OK")
</pallas_src>

<mosaic_0001>
module attributes {stable_mosaic.version = 11 : i64} {
  func.func @_directional_loss_kernel(%arg0: i32, %arg1: i32, %arg2: memref<8x8xf32, #tpu.memory_space<vmem>>, %arg3: memref<8x8xf32, #tpu.memory_space<vmem>>, %arg4: memref<1x128xf32, #tpu.memory_space<vmem>>, %arg5: memref<8x8xf32, #tpu.memory_space<vmem>>, %arg6: memref<8x8xf32, #tpu.memory_space<vmem>>) attributes {dimension_semantics = [#tpu.dimension_semantics<parallel>, #tpu.dimension_semantics<arbitrary>], iteration_bounds = array<i64: 1, 1>, scalar_prefetch = 0 : i64, scratch_operands = 2 : i64, tpu.core_type = #tpu.core_type<tc>, window_params = [{transform_indices = @transform_0, window_bounds = array<i64: 8, 8>}, {transform_indices = @transform_1, window_bounds = array<i64: 8, 8>}, {transform_indices = @transform_2, window_bounds = array<i64: 1, 128>}]} {
    %c1_i32 = arith.constant 1 : i32
    %0 = arith.muli %arg0, %c1_i32 : i32
    %1 = arith.addi %0, %arg1 : i32
    %c0_i32 = arith.constant 0 : i32
    %2 = arith.cmpi eq, %arg1, %c0_i32 : i32
    %3 = arith.extui %2 : i1 to i32
    %c0_i32_0 = arith.constant 0 : i32
    %4 = arith.cmpi ne, %3, %c0_i32_0 : i32
    scf.if %4 {
      %cst = arith.constant 0.000000e+00 : f32
      %14 = vector.broadcast %cst : f32 to vector<8x8xf32>
      %c0 = arith.constant 0 : index
      %c0_7 = arith.constant 0 : index
      %15 = vector.load %arg5[%c0, %c0_7] : memref<8x8xf32, #tpu.memory_space<vmem>>, vector<8x8xf32>
      tpu.vector_store %arg5[%c0, %c0_7], %14 {strides = array<i32>} : memref<8x8xf32, #tpu.memory_space<vmem>>, vector<8x8xf32>,
      %cst_8 = arith.constant 0.000000e+00 : f32
      %16 = vector.broadcast %cst_8 : f32 to vector<8x8xf32>
      %c0_9 = arith.constant 0 : index
      %c0_10 = arith.constant 0 : index
      %17 = vector.load %arg6[%c0_9, %c0_10] : memref<8x8xf32, #tpu.memory_space<vmem>>, vector<8x8xf32>
      tpu.vector_store %arg6[%c0_9, %c0_10], %16 {strides = array<i32>} : memref<8x8xf32, #tpu.memory_space<vmem>>, vector<8x8xf32>,
    } else {
    }
    %c0_i32_1 = arith.constant 0 : i32
    %5 = arith.cmpi slt, %1, %c0_i32_1 : i32
    %6 = arith.extui %5 : i1 to i32
    %c0_i32_2 = arith.constant 0 : i32
    %7 = arith.cmpi ne, %6, %c0_i32_2 : i32
    scf.if %7 {
      %c0 = arith.constant 0 : index
      %c0_7 = arith.constant 0 : index
      %14 = vector.load %arg2[%c0, %c0_7] : memref<8x8xf32, #tpu.memory_space<vmem>>, vector<8x8xf32>
      %c0_8 = arith.constant 0 : index
      %c0_9 = arith.constant 0 : index
      %15 = vector.load %arg3[%c0_8, %c0_9] : memref<8x8xf32, #tpu.memory_space<vmem>>, vector<8x8xf32>
      %16 = arith.subf %14, %15 : vector<8x8xf32>
      %17 = arith.mulf %16, %16 : vector<8x8xf32>
      %18 = vector.extract_strided_slice %14 {offsets = [0, 1], sizes = [8, 7], strides = [1, 1]} : vector<8x8xf32> to vector<8x7xf32>
      %19 = vector.extract_strided_slice %14 {offsets = [0, 0], sizes = [8, 7], strides = [1, 1]} : vector<8x8xf32> to vector<8x7xf32>
      %20 = arith.subf %18, %19 : vector<8x7xf32>
      %cst = arith.constant 0.000000e+00 : f32
      %21 = vector.broadcast %cst : f32 to vector<8x7xf32>
      %22 = arith.cmpf ogt, %20, %21 : vector<8x7xf32>
      %23 = vector.extract_strided_slice %15 {offsets = [0, 1], sizes = [8, 7], strides = [1, 1]} : vector<8x8xf32> to vector<8x7xf32>
      %24 = vector.extract_strided_slice %15 {offsets = [0, 0], sizes = [8, 7], strides = [1, 1]} : vector<8x8xf32> to vector<8x7xf32>
      %25 = arith.subf %23, %24 : vector<8x7xf32>
      %cst_10 = arith.constant 0.000000e+00 : f32
      %26 = vector.broadcast %cst_10 : f32 to vector<8x7xf32>
      %27 = arith.cmpf ogt, %25, %26 : vector<8x7xf32>
      %28 = arith.xori %22, %27 : vector<8x7xi1>
      %cst_11 = arith.constant dense<true> : vector<8x7xi1>
      %29 = arith.xori %28, %cst_11 : vector<8x7xi1>
      %30 = arith.extui %29 : vector<8x7xi1> to vector<8x7xi32>
      %31 = arith.sitofp %30 : vector<8x7xi32> to vector<8x7xf32>
      %c0_i32_12 = arith.constant 0 : i32
      %32 = arith.sitofp %c0_i32_12 : i32 to f32
      %33 = vector.broadcast %32 : f32 to vector<8x1xf32>
      %34 = tpu.concatenate %33, %31 in 1 : vector<8x1xf32>, vector<8x7xf32> -> vector<8x8xf32>
      %c0_13 = arith.constant 0 : index
      %c0_14 = arith.constant 0 : index
      %35 = vector.load %arg5[%c0_13, %c0_14] : memref<8x8xf32, #tpu.memory_space<vmem>>, vector<8x8xf32>
      %36 = vector.shape_cast %17 : vector<8x8xf32> to vector<1x8x8xf32>
      %cst_15 = arith.constant dense<0.000000e+00> : vector<8x8xf32>
      %37 = vector.multi_reduction <add>, %36, %cst_15 [0] : vector<1x8x8xf32> to vector<8x8xf32>
      %38 = arith.addf %35, %37 : vector<8x8xf32>
      %c0_16 = arith.constant 0 : index
      %c0_17 = arith.constant 0 : index
      %39 = vector.load %arg5[%c0_16, %c0_17] : memref<8x8xf32, #tpu.memory_space<vmem>>, vector<8x8xf32>
      tpu.vector_store %arg5[%c0_16, %c0_17], %38 {strides = array<i32>} : memref<8x8xf32, #tpu.memory_space<vmem>>, vector<8x8xf32>,
      %c0_18 = arith.constant 0 : index
      %c0_19 = arith.constant 0 : index
      %40 = vector.load %arg6[%c0_18, %c0_19] : memref<8x8xf32, #tpu.memory_space<vmem>>, vector<8x8xf32>
      %41 = vector.shape_cast %34 : vector<8x8xf32> to vector<1x8x8xf32>
      %cst_20 = arith.constant dense<0.000000e+00> : vector<8x8xf32>
      %42 = vector.multi_reduction <add>, %41, %cst_20 [0] : vector<1x8x8xf32> to vector<8x8xf32>
      %43 = arith.addf %40, %42 : vector<8x8xf32>
      %c0_21 = arith.constant 0 : index
      %c0_22 = arith.constant 0 : index
      %44 = vector.load %arg6[%c0_21, %c0_22] : memref<8x8xf32, #tpu.memory_space<vmem>>, vector<8x8xf32>
      tpu.vector_store %arg6[%c0_21, %c0_22], %43 {strides = array<i32>} : memref<8x8xf32, #tpu.memory_space<vmem>>, vector<8x8xf32>,
    } else {
    }
    %c0_i32_3 = arith.constant 0 : i32
    %8 = arith.cmpi eq, %1, %c0_i32_3 : i32
    %9 = arith.extui %8 : i1 to i32
    %c0_i32_4 = arith.constant 0 : i32
    %10 = arith.cmpi ne, %9, %c0_i32_4 : i32
    scf.if %10 {
      %c0 = arith.constant 0 : index
      %c0_7 = arith.constant 0 : index
      %14 = vector.load %arg2[%c0, %c0_7] : memref<8x8xf32, #tpu.memory_space<vmem>>, vector<8x8xf32>
      %c0_8 = arith.constant 0 : index
      %c0_9 = arith.constant 0 : index
      %15 = vector.load %arg3[%c0_8, %c0_9] : memref<8x8xf32, #tpu.memory_space<vmem>>, vector<8x8xf32>
      %16 = arith.subf %14, %15 : vector<8x8xf32>
      %17 = arith.mulf %16, %16 : vector<8x8xf32>
      %18 = vector.extract_strided_slice %14 {offsets = [0, 1], sizes = [8, 7], strides = [1, 1]} : vector<8x8xf32> to vector<8x7xf32>
      %19 = vector.extract_strided_slice %14 {offsets = [0, 0], sizes = [8, 7], strides = [1, 1]} : vector<8x8xf32> to vector<8x7xf32>
      %20 = arith.subf %18, %19 : vector<8x7xf32>
      %cst = arith.constant 0.000000e+00 : f32
      %21 = vector.broadcast %cst : f32 to vector<8x7xf32>
      %22 = arith.cmpf ogt, %20, %21 : vector<8x7xf32>
      %23 = vector.extract_strided_slice %15 {offsets = [0, 1], sizes = [8, 7], strides = [1, 1]} : vector<8x8xf32> to vector<8x7xf32>
      %24 = vector.extract_strided_slice %15 {offsets = [0, 0], sizes = [8, 7], strides = [1, 1]} : vector<8x8xf32> to vector<8x7xf32>
      %25 = arith.subf %23, %24 : vector<8x7xf32>
      %cst_10 = arith.constant 0.000000e+00 : f32
      %26 = vector.broadcast %cst_10 : f32 to vector<8x7xf32>
      %27 = arith.cmpf ogt, %25, %26 : vector<8x7xf32>
      %28 = arith.xori %22, %27 : vector<8x7xi1>
      %cst_11 = arith.constant dense<true> : vector<8x7xi1>
      %29 = arith.xori %28, %cst_11 : vector<8x7xi1>
      %30 = arith.extui %29 : vector<8x7xi1> to vector<8x7xi32>
      %31 = arith.sitofp %30 : vector<8x7xi32> to vector<8x7xf32>
      %c0_i32_12 = arith.constant 0 : i32
      %32 = arith.sitofp %c0_i32_12 : i32 to f32
      %33 = vector.broadcast %32 : f32 to vector<8x1xf32>
      %34 = tpu.concatenate %33, %31 in 1 : vector<8x1xf32>, vector<8x7xf32> -> vector<8x8xf32>
      %35 = tpu.iota {dimensions = array<i32: 0>} : vector<8x8xi32>
      %c2_i32 = arith.constant 2 : i32
      %36 = vector.broadcast %c2_i32 : i32 to vector<8x8xi32>
      %37 = arith.cmpi slt, %35, %36 : vector<8x8xi32>
      %cst_13 = arith.constant 0.000000e+00 : f32
      %38 = vector.broadcast %cst_13 : f32 to vector<8x8xf32>
      %39 = arith.select %37, %17, %38 : vector<8x8xi1>, vector<8x8xf32>
      %cst_14 = arith.constant 0.000000e+00 : f32
      %40 = vector.broadcast %cst_14 : f32 to vector<8x8xf32>
      %41 = arith.select %37, %34, %40 : vector<8x8xi1>, vector<8x8xf32>
      %c0_15 = arith.constant 0 : index
      %c0_16 = arith.constant 0 : index
      %42 = vector.load %arg5[%c0_15, %c0_16] : memref<8x8xf32, #tpu.memory_space<vmem>>, vector<8x8xf32>
      %43 = vector.shape_cast %39 : vector<8x8xf32> to vector<1x8x8xf32>
      %cst_17 = arith.constant dense<0.000000e+00> : vector<8x8xf32>
      %44 = vector.multi_reduction <add>, %43, %cst_17 [0] : vector<1x8x8xf32> to vector<8x8xf32>
      %45 = arith.addf %42, %44 : vector<8x8xf32>
      %c0_18 = arith.constant 0 : index
      %c0_19 = arith.constant 0 : index
      %46 = vector.load %arg5[%c0_18, %c0_19] : memref<8x8xf32, #tpu.memory_space<vmem>>, vector<8x8xf32>
      tpu.vector_store %arg5[%c0_18, %c0_19], %45 {strides = array<i32>} : memref<8x8xf32, #tpu.memory_space<vmem>>, vector<8x8xf32>,
      %c0_20 = arith.constant 0 : index
      %c0_21 = arith.constant 0 : index
      %47 = vector.load %arg6[%c0_20, %c0_21] : memref<8x8xf32, #tpu.memory_space<vmem>>, vector<8x8xf32>
      %48 = vector.shape_cast %41 : vector<8x8xf32> to vector<1x8x8xf32>
      %cst_22 = arith.constant dense<0.000000e+00> : vector<8x8xf32>
      %49 = vector.multi_reduction <add>, %48, %cst_22 [0] : vector<1x8x8xf32> to vector<8x8xf32>
      %50 = arith.addf %47, %49 : vector<8x8xf32>
      %c0_23 = arith.constant 0 : index
      %c0_24 = arith.constant 0 : index
      %51 = vector.load %arg6[%c0_23, %c0_24] : memref<8x8xf32, #tpu.memory_space<vmem>>, vector<8x8xf32>
      tpu.vector_store %arg6[%c0_23, %c0_24], %50 {strides = array<i32>} : memref<8x8xf32, #tpu.memory_space<vmem>>, vector<8x8xf32>,
    } else {
    }
    %c0_i32_5 = arith.constant 0 : i32
    %11 = arith.cmpi eq, %arg1, %c0_i32_5 : i32
    %12 = arith.extui %11 : i1 to i32
    %c0_i32_6 = arith.constant 0 : i32
    %13 = arith.cmpi ne, %12, %c0_i32_6 : i32
    scf.if %13 {
      %14 = tpu.iota {dimensions = array<i32: 1>} : vector<8x8xi32>
      %c1_i32_7 = arith.constant 1 : i32
      %15 = vector.broadcast %c1_i32_7 : i32 to vector<8x8xi32>
      %16 = arith.cmpi sge, %14, %15 : vector<8x8xi32>
      %c0 = arith.constant 0 : index
      %c0_8 = arith.constant 0 : index
      %17 = vector.load %arg6[%c0, %c0_8] : memref<8x8xf32, #tpu.memory_space<vmem>>, vector<8x8xf32>
      %cst = arith.constant 0.000000e+00 : f32
      %18 = vector.broadcast %cst : f32 to vector<8x8xf32>
      %19 = arith.select %16, %17, %18 : vector<8x8xi1>, vector<8x8xf32>
      %20 = vector.shape_cast %19 : vector<8x8xf32> to vector<1x8x8xf32>
      %cst_9 = arith.constant dense<0.000000e+00> : vector<1xf32>
      %21 = vector.multi_reduction <add>, %20, %cst_9 [1, 2] : vector<1x8x8xf32> to vector<1xf32>
      %22 = vector.shape_cast %21 : vector<1xf32> to vector<1x1x1xf32>
      %23 = vector.extract %22[0, 0, 0] : f32 from vector<1x1x1xf32>
      %c0_10 = arith.constant 0 : index
      %c0_11 = arith.constant 0 : index
      %24 = vector.load %arg5[%c0_10, %c0_11] : memref<8x8xf32, #tpu.memory_space<vmem>>, vector<8x8xf32>
      %25 = vector.shape_cast %24 : vector<8x8xf32> to vector<1x8x8xf32>
      %cst_12 = arith.constant dense<0.000000e+00> : vector<1xf32>
      %26 = vector.multi_reduction <add>, %25, %cst_12 [1, 2] : vector<1x8x8xf32> to vector<1xf32>
      %27 = vector.shape_cast %26 : vector<1xf32> to vector<1x1x1xf32>
      %28 = vector.extract %27[0, 0, 0] : f32 from vector<1x1x1xf32>
      %29 = tpu.iota {dimensions = array<i32: 1>} : vector<1x128xi32>
      %c0_i32_13 = arith.constant 0 : i32
      %30 = vector.broadcast %c0_i32_13 : i32 to vector<1x128xi32>
      %31 = arith.cmpi eq, %29, %30 : vector<1x128xi32>
      %cst_14 = arith.constant 0.000000e+00 : f32
      %32 = vector.broadcast %28 : f32 to vector<1x128xf32>
      %33 = vector.broadcast %cst_14 : f32 to vector<1x128xf32>
      %34 = arith.select %31, %32, %33 : vector<1x128xi1>, vector<1x128xf32>
      %c1_i32_15 = arith.constant 1 : i32
      %35 = vector.broadcast %c1_i32_15 : i32 to vector<1x128xi32>
      %36 = arith.cmpi eq, %29, %35 : vector<1x128xi32>
      %cst_16 = arith.constant 0.000000e+00 : f32
      %37 = vector.broadcast %23 : f32 to vector<1x128xf32>
      %38 = vector.broadcast %cst_16 : f32 to vector<1x128xf32>
      %39 = arith.select %36, %37, %38 : vector<1x128xi1>, vector<1x128xf32>
      %40 = arith.addf %34, %39 : vector<1x128xf32>
      %c0_17 = arith.constant 0 : index
      %c0_18 = arith.constant 0 : index
      %41 = vector.load %arg4[%c0_17, %c0_18] : memref<1x128xf32, #tpu.memory_space<vmem>>, vector<1x128xf32>
      tpu.vector_store %arg4[%c0_17, %c0_18], %40 {strides = array<i32>} : memref<1x128xf32, #tpu.memory_space<vmem>>, vector<1x128xf32>,
    } else {
    }
    return
  }
  func.func @transform_0(%arg0: i32, %arg1: i32) -> (i32, i32) {
    %c1_i32 = arith.constant 1 : i32
    %0 = arith.muli %arg0, %c1_i32 : i32
    %1 = arith.addi %0, %arg1 : i32
    %c0_i32 = arith.constant 0 : i32
    %2 = arith.minsi %1, %c0_i32 : i32
    %c0_i32_0 = arith.constant 0 : i32
    %c0_i32_1 = arith.constant 0 : i32
    return %2, %c0_i32_0 : i32, i32
  }
  func.func @transform_1(%arg0: i32, %arg1: i32) -> (i32, i32) {
    %c1_i32 = arith.constant 1 : i32
    %0 = arith.muli %arg0, %c1_i32 : i32
    %1 = arith.addi %0, %arg1 : i32
    %c0_i32 = arith.constant 0 : i32
    %2 = arith.minsi %1, %c0_i32 : i32
    %c0_i32_0 = arith.constant 0 : i32
    %c0_i32_1 = arith.constant 0 : i32
    return %2, %c0_i32_0 : i32, i32
  }
  func.func @transform_2(%arg0: i32, %arg1: i32) -> (i32, i32) {
    %c0_i32 = arith.constant 0 : i32
    %c0_i32_0 = arith.constant 0 : i32
    return %arg0, %c0_i32 : i32, i32
  }
}

</mosaic_0001>

<bundles_post_ra>
// kernel: tpu_custom_call.1
= control target key start
LH: loop header
LB: loop body
LE: loop exit
PB: predicated region body
PF: predicated region fallthrough
CT: control target
= control target key end

     0   :  { %7 = vsyncpa [#allocation5], 0  ;;  %s346_s0 = inlined_call_operand.hbm [shape: f32[2,8], index: 0, kind: input, shape index: {}]   ;;  %s347_s1 = inlined_call_operand.vmem [shape: f32[2,8], index: 1, kind: input, shape index: {}]   ;;  %s348_s2 = inlined_call_operand.hbm [shape: f32[1,128], index: 2, kind: output, shape index: {}]  }
   0x1   :  { %8 = vsyncpa [#allocation6], 0 }
   0x2   :  { %19 = vsyncadd [#allocation5], 96  ;;  %s289_s9 = smov [#allocation4]   ;;  %s241_s13 = scalar_lea.hbm %s346_s0, 32 }
   0x3   :  { %s24_s10 = sshll.u32 %s289_s9, 4  ;;  %p242_p0 = scmp.ne.s32.totalorder %s346_s0, %s241_s13  ;;  %s25_s10 = int_to_ptr.vmem [resolvable:$true] %s24_s10 }
   0x4   :  { %p245_p1 = scmp.lt.u32.totalorder %s241_s13, %s346_s0 }
   0x6   :  { %p247_p2 = pnand %p245_p1, %p242_p0 }
   0x8   :  { %250 = shalt.err (!%p247_p2)
}
   0x9   :  { %s251_s18 = scalar_lea.vmem %s25_s10, 32  ;;  %s255_s19 = scalar_lea.vmem %s25_s10, 128 }
   0xa   :  { %p252_p3 = scmp.ne.s32.totalorder %s25_s10, %s251_s18  ;;  %p256_p4 = scmp.lt.s32.totalorder %s25_s10, %s25_s10 }
   0xb   :  { %p257_p5 = scmp.lt.s32.totalorder %s255_s19, %s251_s18 }
   0xd   :  { %p258_p6 = por %p257_p5, %p256_p4 }
   0xf   :  { %p259_p7 = pnand %p258_p6, %p252_p3 }
  0x11   :  { %262 = shalt.err (!%p259_p7)
}
  0x12   :  { %s290_s20 = smov 32   ;;  %s291_s21 = smov 2  }
  0x13   :  { %30 = dma.hbm_to_vmem [thread:$0]  %s346_s0, 32, %s25_s10, [#allocation5], %s290_s20, %s290_s20, %s291_s21  }
  0x14   :  { %285 = dma.done.wait [#allocation5], 128  }
  0x15   :  { %286 = vsyncadd [#allocation5], 4294967168  ;;  %vm89_vm0 = vcmask 64512   ;;  %v292_v0 = vmov 0.0   ;;  %v153_v1 = vlaneseq  ;;  %v131_v2 = vld [vmem:[#allocation4] sm:$0xff]  ;;  %v132_v3 = vld [vmem:[%s347_s1] sm:$0xff] }
  0x16   :  { %90 = vst.msk [vmem:[#allocation2] sm:$0xff] %vm89_vm0, %v292_v0  ;;  %91 = vst.msk [vmem:[#allocation3] sm:$0xff] %vm89_vm0, %v292_v0  ;;  %s293_s26 = smov 1   ;;  %v133_v5 = vsub.f32 %v131_v2, %v132_v3  ;;  %vm151_vm4 = vcmask 7168   ;;  %vm294_vm6 = vmmov 1   ;;  %s295_s27 = smov [#allocation7]  }
  0x17   :  { %v154_v4 = vshrl.u32 %v153_v1, 7  ;;  %136 = vrot.lane.b32.xlu0 %v131_v2, %s293_s26  ;;  %v171_v19 = vand.u32 127, %v153_v1  ;;  %s211_s28 = sshll.u32 %s295_s27, 4  ;;  %s212_s28 = int_to_ptr.vmem [resolvable:$true] %s211_s28 }
  0x18   :  { %v134_v6 = vmul.f32 %v133_v5, %v133_v5  ;;  %s263_s29 = scalar_lea.vmem %s212_s28, 16  ;;  %s267_s30 = scalar_lea.vmem %s212_s28, 32 }
  0x19   :  { %vm155_vm1 = vcmp.lt.s32.totalorder %v154_v4, 2  ;;  %vm172_vm8 = vcmp.ge.s32.totalorder %v171_v19, 1  ;;  %vm200_vm9 = vcmp.eq.s32.totalorder %v171_v19, 1  ;;  %vm197_vm10 = vcmp.eq.s32.totalorder %v171_v19, 0  ;;  %p264_p8 = scmp.ne.s32.totalorder %s212_s28, %s263_s29  ;;  %p268_p9 = scmp.lt.s32.totalorder %s212_s28, %s212_s28 }
  0x1a   :  { %v156_v8 = vsel %vm155_vm1, %v134_v6, 0.0  ;;  %p269_p10 = scmp.lt.s32.totalorder %s267_s30, %s263_s29 }
  0x1b   :  { %142 = vrot.lane.b32.xlu0 %v132_v3, %s293_s26 }
  0x1c   :  { %p270_p11 = por %p269_p10, %p268_p9 }
  0x1d   :  { %v158_v7 = vld [vmem:[#allocation2] sm:$0xff]  ;;  %v163_v15 = vld [vmem:[#allocation3] sm:$0xff] }
  0x1e   :  { %v160_v9 = vadd.f32 %v158_v7, %v156_v8  ;;  %p271_p12 = pnand %p270_p11, %p264_p8 }
  0x20   :  { %162 = vst.msk [vmem:[#allocation2] sm:$0xff] %vm89_vm0, %v160_v9 }
  0x27   :  { %v186_v22 = vld [vmem:[#allocation2] sm:$0xff] }
  0x28   :  { %v187_v24 = vsel %vm89_vm0, %v186_v22, 0.0 }
  0x89   :  { %v137_v10 = vpop.permute.xlu0 %136 }
  0x8a   :  { %v139_v11 = vsub.f32 %v131_v2, %v137_v10 }
  0x8c   :  { %vm140_vm2 = vcmp.gt.f32.partialorder %v139_v11, 0.0 }
  0x8d   :  { %v143_v12 = vpop.permute.xlu0 %142 }
  0x8e   :  { %v145_v13 = vsub.f32 %v132_v3, %v143_v12 }
  0x90   :  { %vm146_vm3 = vcmp.gt.f32.partialorder %v145_v13, 0.0 }
  0x91   :  { %vm147_vm5 = vmxor %vm140_vm2, %vm146_vm3 }
  0x92   :  { %vm148_vm7 = vmxor %vm147_vm5, %vm294_vm6 }
  0x93   :  { %v229_v14 = vsel %vm148_vm7, 1.0, %v292_v0 }
  0x94   :  { %v152_v16 = vsel %vm151_vm4, 0.0, %v229_v14 }
  0x95   :  { %v157_v17 = vsel %vm155_vm1, %v152_v16, 0.0 }
  0x96   :  { %v165_v18 = vadd.f32 %v163_v15, %v157_v17 }
  0x98   :  { %166 = vst.msk [vmem:[#allocation3] sm:$0xff] %vm89_vm0, %v165_v18 }
  0x9f   :  { %v173_v20 = vld [vmem:[#allocation3] sm:$0xff] }
  0xa0   :  { %v174_v21 = vsel %vm172_vm8, %v173_v20, 0.0 }
  0xa1   :  { %v176_v23 = vsel %vm89_vm0, %v174_v21, 0.0 }
  0xa2   :  { %177 = vadd.xlane.f32.xlu1 %v176_v23 }
  0xa6   :  { %188 = vadd.xlane.f32.xlu1 %v187_v24 }
 0x12f   :  { %v178_v25 = vpop.xlane.xlu1 %177 }
 0x130   :  { %v179_v26 = vrot.slane %v178_v25, 4 }
 0x132   :  { %v180_v27 = vadd.f32 %v179_v26, %v178_v25 }
 0x133   :  { %v189_v28 = vpop.xlane.xlu1 %188 }
 0x134   :  { %v181_v29 = vrot.slane %v180_v27, 2  ;;  %v190_v30 = vrot.slane %v189_v28, 4 }
 0x136   :  { %v191_v31 = vadd.f32 %v190_v30, %v189_v28  ;;  %v182_v32 = vadd.f32 %v181_v29, %v180_v27 }
 0x138   :  { %v192_v33 = vrot.slane %v191_v31, 2  ;;  %v183_v34 = vrot.slane %v182_v32, 1 }
 0x13a   :  { %v193_v35 = vadd.f32 %v192_v33, %v191_v31  ;;  %v184_v36 = vadd.f32 %v183_v34, %v182_v32 }
 0x13c   :  { %230 = vpush %v184_v36  ;;  %v194_v37 = vrot.slane %v193_v35, 1 }
 0x13e   :  { %v195_v38 = vadd.f32 %v194_v37, %v193_v35 }
 0x140   :  { %232 = vpush %v195_v38 }
 0x16d   :  { %s231_s0 = spop %230 }
 0x16e   :  { %v201_v39 = vstv %s231_s0 }
 0x16f   :  { %v202_v41 = vsel %vm200_vm9, %v201_v39, 0.0 }
 0x171   :  { %s233_s1 = spop %232 }
 0x172   :  { %v198_v40 = vstv %s233_s1 }
 0x173   :  { %v199_v42 = vsel %vm197_vm10, %v198_v40, 0.0 }
 0x174   :  { %v203_v43 = vadd.f32 %v202_v41, %v199_v42 }
 0x176   :  { %204 = vst [vmem:[#allocation7] sm:$0x1] %v203_v43 }
 0x177   :  { %274 = shalt.err (!%p271_p12)
}
 0x178   :  { %s275_s5 = scalar_lea.hbm %s348_s2, 16 }
 0x179   :  { %p276_p13 = scmp.ne.s32.totalorder %s348_s2, %s275_s5  ;;  %p279_p0 = scmp.lt.u32.totalorder %s275_s5, %s348_s2 }
 0x17b   :  { %p281_p1 = pnand %p279_p0, %p276_p13 }
 0x17d   :  { %284 = shalt.err (!%p281_p1)
}
 0x17e   :  { %214 = dma.vmem_to_hbm [thread:$0]  %s212_s28, 16, %s348_s2, [#allocation6]  }
 0x17f   :  { %287 = dma.done.wait [#allocation6], 16  }
 0x180   :  { %288 = vsyncadd [#allocation6], 4294967280 }
 0x181   :  { %218 = vsyncpa [#allocation5], 1 }
 0x182   :  { %219 = vsyncpa [#allocation6], 1 }

</bundles_post_ra>
